<compile_context>
chip_gen: v5e
topology: v5e:2x2
jax: 0.10.0
libtpu: 0.0.40
codegen_flags: <defaults>
</compile_context>

<pallas_src>
import functools

import jax
import jax.numpy as jnp
from jax.experimental import pallas as pl
from jax.experimental.pallas import tpu as pltpu

_OUT_SUB = 8
_OUT_LANE = 128


def _round_up(n, m):
    return ((n + m - 1) // m) * m


def _center_loss_kernel(labels_ref, x_ref, centers_ref, out_ref, *, batch,
                        num_classes):
    """Per-batch-tile partial sum of clamp(||x_b - c_{label_b}||^2, 1e-12, 1e12)."""
    tile = pl.program_id(0)
    block_b = x_ref.shape[0]
    base = tile * block_b

    # One-hot selection matmul gather on the MXU (replaces the old serial
    # per-row sublane-copy loop).  Exact: one operand is exactly 0/1 and
    # HIGHEST precision reconstructs the f32 centers bit-exactly.
    lbl = labels_ref[...]                                         # (tb, 1) i32
    classes = jax.lax.broadcasted_iota(jnp.int32, (block_b, num_classes), 1)
    one_hot = (lbl == classes).astype(jnp.float32)                # (tb, C)

    centers = centers_ref[...].astype(jnp.float32)                # (C, D) f32
    gathered = jax.lax.dot_general(
        one_hot, centers,
        dimension_numbers=(((1,), (0,)), ((), ())),
        preferred_element_type=jnp.float32,
        precision=jax.lax.Precision.HIGHEST)                      # (tb, D) f32

    # All reduction/diff math in f32 on the VPU (bf16 is storage/DMA only).
    x = x_ref[...].astype(jnp.float32)                            # (tb, D)
    diff = x - gathered
    d = jnp.sum(diff * diff, axis=1, keepdims=True)               # (tb, 1)
    d = jnp.clip(d, 1e-12, 1e12)

    # Padded rows (global row index >= batch) must contribute exactly nothing.
    row = jax.lax.broadcasted_iota(jnp.int32, (block_b, 1), 0) + base
    d = jnp.where(row < batch, d, 0.0)

    # Vreg-aligned (1, 8, 128) unmasked store of this tile's partial sum;
    # the wrapper reads [:, 0, 0] and reduces.
    out_ref[...] = jnp.full(out_ref.shape, jnp.sum(d), dtype=jnp.float32)


def center_loss(x, labels, centers, *, target_tile_bytes=2 << 20,
                max_block_rows=2048):
    """x: (B, D), labels: (B,) int, centers: (C, D) -> scalar f32 loss.

    Inputs are streamed in their native dtype (no wrapper-side upcast copy).
    """
    B, D = x.shape
    C, Dc = centers.shape
    assert D == Dc
    labels = labels.astype(jnp.int32).reshape(B, 1)

    # Byte-based batch-tile sizing: aim for ~2 MiB x tiles (HBM-roofline
    # friendly), bounded by the (tb, C) one-hot temporary and a hard row cap.
    x_bytes = x.dtype.itemsize
    c_bytes = centers.dtype.itemsize
    rows_for_x = max(8, target_tile_bytes // max(1, x_bytes * D))
    rows_for_onehot = max(8, (4 << 20) // (4 * C))
    tb = min(_round_up(B, 8), _round_up(rows_for_x, 8),
             _round_up(rows_for_onehot, 8), max_block_rows)
    tb = max(8, (tb // 8) * 8)

    num_tiles = -(-B // tb)
    # v7x has 2 TensorCores: prefer at least 2 grid tiles when the batch
    # allows it (neutral on single-TC v5e/v6e).
    if num_tiles == 1 and B > 8:
        tb = _round_up(-(-B // 2), 8)
        num_tiles = -(-B // tb)
    b_pad = num_tiles * tb

    if b_pad != B:
        x = jnp.pad(x, ((0, b_pad - B), (0, 0)))
        labels = jnp.pad(labels, ((0, b_pad - B), (0, 0)))

    kernel = functools.partial(_center_loss_kernel, batch=B, num_classes=C)

    # VMEM budget: double-buffered x/labels tiles + resident centers block +
    # output blocks + in-kernel temporaries, with headroom.
    needed = (
        2 * tb * D * x_bytes             # double-buffered x tiles
        + 2 * tb * 4                     # double-buffered labels tiles
        + 2 * C * D * c_bytes            # centers block (grid-invariant)
        + 2 * _OUT_SUB * _OUT_LANE * 4   # output blocks
        + tb * C * 4                     # one-hot temporary
        + (C * D + 4 * tb * D) * 4       # f32 upcasts / diff temporaries
        + (2 << 20)                      # headroom
    )
    # Generation-aware cap (v5e/v6e: 128 MiB physical, v7x: 64 MiB) and never
    # clamp below what is actually needed.
    try:
        phys_vmem = pltpu.get_tpu_info().vmem_capacity_bytes
    except Exception:
        phys_vmem = 64 * 1024 * 1024
    cap = (phys_vmem * 3) // 4
    vmem_limit = int(max(min(max(needed, 32 * 1024 * 1024), cap), needed))

    grid_spec = pltpu.PrefetchScalarGridSpec(
        num_scalar_prefetch=0,
        grid=(num_tiles,),
        in_specs=[
            pl.BlockSpec((tb, 1), lambda i: (i, 0)),    # labels tile
            pl.BlockSpec((tb, D), lambda i: (i, 0)),    # x tile, native dtype
            # TODO(synk): for very large C*D (> ~12-16 MiB, esp. on v7x),
            # keep centers in HBM (memory_space=pl.ANY) and DMA-gather only
            # the labelled rows per tile instead of a VMEM-resident block.
            pl.BlockSpec((C, D), lambda i: (0, 0)),     # centers, grid-invariant
        ],
        out_specs=pl.BlockSpec((1, _OUT_SUB, _OUT_LANE),
                               lambda i: (i, 0, 0)),
    )

    partials = pl.pallas_call(
        kernel,
        out_shape=jax.ShapeDtypeStruct((num_tiles, _OUT_SUB, _OUT_LANE),
                                       jnp.float32),
        grid_spec=grid_spec,
        compiler_params=pltpu.CompilerParams(
            dimension_semantics=("parallel",),
            vmem_limit_bytes=vmem_limit,
        ),
    )(labels, x, centers)

    per_tile = partials[:, 0, 0]                         # (num_tiles,)
    # Reference clamps AFTER masking, so each of the B*(C-1) masked-off
    # entries contributes exactly 1e-12; added analytically in f32 (mirrors
    # what a full f32 reference reduction would resolve).
    masked_off = jnp.float32(B) * jnp.float32(C - 1) * jnp.float32(1e-12)
    return (jnp.sum(per_tile) + masked_off) / jnp.float32(B)


def _center_loss_ref(x, labels, centers):
    """Pure-JAX reference mirroring the PyTorch forward exactly."""
    B = x.shape[0]
    C = centers.shape[0]
    xx = x.astype(jnp.float32)
    cc = centers.astype(jnp.float32)
    distmat = (
        jnp.sum(xx ** 2, axis=1, keepdims=True)
        + jnp.sum(cc ** 2, axis=1)[None, :]
        - 2.0 * jnp.dot(xx, cc.T, precision=jax.lax.Precision.HIGHEST)
    )
    mask = labels[:, None] == jnp.arange(C)[None, :]
    dist = jnp.where(mask, distmat, 0.0)
    return jnp.sum(jnp.clip(dist, 1e-12, 1e12)) / B


if __name__ == "__main__":
    key = jax.random.PRNGKey(0)
    kx, kc, kl = jax.random.split(key, 3)

    batch, num_classes, feat_dim = 8, 10, 2

    x = jax.random.normal(kx, (batch, feat_dim), dtype=jnp.float32)
    # deterministic synthetic "parameter" (nn.Parameter(torch.randn(C, D)))
    centers = jax.random.normal(kc, (num_classes, feat_dim), dtype=jnp.float32)
    labels = jax.random.randint(kl, (batch,), 0, num_classes, dtype=jnp.int32)

    loss = center_loss(x, labels, centers)
    jax.block_until_ready(loss)

    ref = _center_loss_ref(x, labels, centers)
    # The kernel computes ||x - c||^2 directly (numerically better than the
    # reference's expanded ||x||^2 + ||c||^2 - 2<x,c> form), so compare with a
    # slightly relaxed relative tolerance.
    assert jnp.allclose(loss, ref, rtol=1e-4, atol=1e-5), (loss, ref)

    print("KERNEL_OK")
</pallas_src>

<mosaic_0001>
module attributes {stable_mosaic.version = 11 : i64} {
  func.func @_center_loss_kernel(%arg0: i32, %arg1: memref<8x1xi32, #tpu.memory_space<vmem>>, %arg2: memref<8x2xf32, #tpu.memory_space<vmem>>, %arg3: memref<10x2xf32, #tpu.memory_space<vmem>>, %arg4: memref<1x8x128xf32, #tpu.memory_space<vmem>>) attributes {dimension_semantics = [#tpu.dimension_semantics<parallel>], iteration_bounds = array<i64: 1>, scalar_prefetch = 0 : i64, scratch_operands = 0 : i64, tpu.core_type = #tpu.core_type<tc>, window_params = [{transform_indices = @transform_0, window_bounds = array<i64: 8, 1>}, {transform_indices = @transform_1, window_bounds = array<i64: 8, 2>}, {pipeline_mode = #tpu.pipeline_mode<synchronous>, transform_indices = @transform_2, window_bounds = array<i64: 10, 2>}, {transform_indices = @transform_3, window_bounds = array<i64: 1, 8, 128>}]} {
    %c8_i32 = arith.constant 8 : i32
    %0 = arith.muli %arg0, %c8_i32 : i32
    %c0 = arith.constant 0 : index
    %c0_0 = arith.constant 0 : index
    %1 = vector.load %arg1[%c0, %c0_0] : memref<8x1xi32, #tpu.memory_space<vmem>>, vector<8x1xi32>
    %2 = tpu.iota {dimensions = array<i32: 1>} : vector<8x10xi32>
    %3 = vector.broadcast %1 : vector<8x1xi32> to vector<8x10xi32>
    %4 = arith.cmpi eq, %3, %2 : vector<8x10xi32>
    %5 = arith.extui %4 : vector<8x10xi1> to vector<8x10xi32>
    %6 = arith.sitofp %5 : vector<8x10xi32> to vector<8x10xf32>
    %c0_1 = arith.constant 0 : index
    %c0_2 = arith.constant 0 : index
    %7 = vector.load %arg3[%c0_1, %c0_2] : memref<10x2xf32, #tpu.memory_space<vmem>>, vector<10x2xf32>
    %cst = arith.constant dense<0.000000e+00> : vector<8x2xf32>
    %8 = tpu.matmul %6, %7, %cst {dimension_numbers = #tpu.dot_dimension_numbers<[1], [0], [0], [1], [0, 0, 1, 1], [], []>, precision = #tpu.contract_precision<fp32>} : vector<8x10xf32>, vector<10x2xf32>, vector<8x2xf32> -> vector<8x2xf32>
    %c0_3 = arith.constant 0 : index
    %c0_4 = arith.constant 0 : index
    %9 = vector.load %arg2[%c0_3, %c0_4] : memref<8x2xf32, #tpu.memory_space<vmem>>, vector<8x2xf32>
    %10 = arith.subf %9, %8 : vector<8x2xf32>
    %11 = arith.mulf %10, %10 : vector<8x2xf32>
    %cst_5 = arith.constant dense<0.000000e+00> : vector<8xf32>
    %12 = vector.multi_reduction <add>, %11, %cst_5 [1] : vector<8x2xf32> to vector<8xf32>
    %13 = vector.shape_cast %12 : vector<8xf32> to vector<8x1xf32>
    %cst_6 = arith.constant 9.99999996E-13 : f32
    %cst_7 = arith.constant 9.99999995E+11 : f32
    %14 = vector.broadcast %cst_6 : f32 to vector<8x1xf32>
    %15 = arith.maximumf %14, %13 : vector<8x1xf32>
    %16 = vector.broadcast %cst_7 : f32 to vector<8x1xf32>
    %17 = arith.minimumf %16, %15 : vector<8x1xf32>
    %18 = tpu.iota {dimensions = array<i32: 0>} : vector<8x1xi32>
    %19 = vector.broadcast %0 : i32 to vector<8x1xi32>
    %20 = arith.addi %18, %19 : vector<8x1xi32>
    %c8_i32_8 = arith.constant 8 : i32
    %21 = vector.broadcast %c8_i32_8 : i32 to vector<8x1xi32>
    %22 = arith.cmpi slt, %20, %21 : vector<8x1xi32>
    %cst_9 = arith.constant 0.000000e+00 : f32
    %23 = vector.broadcast %cst_9 : f32 to vector<8x1xf32>
    %24 = arith.select %22, %17, %23 : vector<8x1xi1>, vector<8x1xf32>
    %25 = vector.shape_cast %24 : vector<8x1xf32> to vector<1x8x1xf32>
    %cst_10 = arith.constant dense<0.000000e+00> : vector<1xf32>
    %26 = vector.multi_reduction <add>, %25, %cst_10 [1, 2] : vector<1x8x1xf32> to vector<1xf32>
    %27 = vector.shape_cast %26 : vector<1xf32> to vector<1x1x1xf32>
    %28 = vector.extract %27[0, 0, 0] : f32 from vector<1x1x1xf32>
    %29 = vector.broadcast %28 : f32 to vector<1x8x128xf32>
    %c0_11 = arith.constant 0 : index
    %c0_12 = arith.constant 0 : index
    %c0_13 = arith.constant 0 : index
    %30 = vector.load %arg4[%c0_11, %c0_12, %c0_13] : memref<1x8x128xf32, #tpu.memory_space<vmem>>, vector<1x8x128xf32>
    tpu.vector_store %arg4[%c0_11, %c0_12, %c0_13], %29 {strides = array<i32>} : memref<1x8x128xf32, #tpu.memory_space<vmem>>, vector<1x8x128xf32>,
    return
  }
  func.func @transform_0(%arg0: i32) -> (i32, i32) {
    %c0_i32 = arith.constant 0 : i32
    %c0_i32_0 = arith.constant 0 : i32
    return %arg0, %c0_i32 : i32, i32
  }
  func.func @transform_1(%arg0: i32) -> (i32, i32) {
    %c0_i32 = arith.constant 0 : i32
    %c0_i32_0 = arith.constant 0 : i32
    return %arg0, %c0_i32 : i32, i32
  }
  func.func @transform_2(%arg0: i32) -> (i32, i32) {
    %c0_i32 = arith.constant 0 : i32
    %c0_i32_0 = arith.constant 0 : i32
    %c0_i32_1 = arith.constant 0 : i32
    return %c0_i32, %c0_i32_0 : i32, i32
  }
  func.func @transform_3(%arg0: i32) -> (i32, i32, i32) {
    %c0_i32 = arith.constant 0 : i32
    %c0_i32_0 = arith.constant 0 : i32
    %c0_i32_1 = arith.constant 0 : i32
    return %arg0, %c0_i32, %c0_i32_0 : i32, i32, i32
  }
}

</mosaic_0001>

<bundles_post_ra>
// kernel: tpu_custom_call.1
= control target key start
LH: loop header
LB: loop body
LE: loop exit
PB: predicated region body
PF: predicated region fallthrough
CT: control target
= control target key end

     0   :  { %vm31_vm0 = vcmask 1041408   ;;  %v274_v2 = vmov 0   ;;  %s312_s0 = inlined_call_operand.vmem [shape: s32[8,1], index: 0, kind: input, shape index: {}]   ;;  %s313_s1 = inlined_call_operand.vmem [shape: f32[8,2], index: 1, kind: input, shape index: {}]   ;;  %s314_s2 = inlined_call_operand.vmem [shape: f32[10,2], index: 2, kind: input, shape index: {}]   ;;  %s315_s3 = inlined_call_operand.hbm [shape: f32[1,8,128], index: 3, kind: output, shape index: {}]  }
   0x1   :  { %v16_v0 = vld [vmem:[%s312_s0] sm:$0xff]  ;;  %v26_v1 = vld [vmem:[%s314_s2 + $0x8] sm:$0x3]  ;;  %247 = vset.pattern.permute.xlu0 %v274_v2 }
   0x2   :  { %v33_v3 = vsel %vm31_vm0, %v26_v1, 0 }
   0x3   :  { %8 = vsyncpa [#allocation3], 0  ;;  %20 = vperm.xlu0 %247, %v16_v0   ;;  %v49_v4 = vand.u32 4294901760, %v33_v3  ;;  %v25_v9 = vld [vmem:[%s314_s2] sm:$0xff]  ;;  %v17_v15 = vlaneseq  ;;  %vm27_vm1 = vcmask 80896   ;;  %v275_v18 = vmov 0.0  }
   0x4   :  { %v51_v10 = vand.u32 4294901760, %v25_v9  ;;  %v194_v35 = vld [vmem:[%s313_s1] sm:$0xff]  ;;  %vm197_vm3 = vcmask 15360   ;;  %vm209_vm4 = vcmask 7168   ;;  %s276_s1 = smov [#allocation2]   ;;  %s229_s21 = sshll.u32 %s315_s3, 4  ;;  %s230_s21 = int_to_ptr.hbm [resolvable:$true] %s229_s21 }
   0x5   :  { %v77_v5 = vsub.f32 %v33_v3, %v49_v4  ;;  %134 = vmatpush.msra.mxu3 %v49_v4  ;;  %50 = vmatpush.msra.mxu0 %v49_v4  ;;  %v18_v16 = vand.u32 127, %v17_v15  ;;  %s227_s18 = sshll.u32 %s276_s1, 4  ;;  %s228_s18 = int_to_ptr.vmem [resolvable:$true] %s227_s18 }
   0x6   :  { %v83_v11 = vsub.f32 %v25_v9, %v51_v10 }
   0x7   :  { %v78_v6 = vand.u32 4294901760, %v77_v5  ;;  %109 = vmatpush.msra.mxu2 %v77_v5  ;;  %136 = vmatpush.msra.mxu3 %v51_v10 }
   0x8   :  { %52 = vmatpush.msra.mxu0 %v51_v10  ;;  %v84_v12 = vand.u32 4294901760, %v83_v11 }
   0x9   :  { %v79_v7 = vsub.f32 %v77_v5, %v78_v6  ;;  %112 = vmatpush.msra.mxu2 %v83_v11 }
   0xa   :  { %161 = vmatpush.msrb.mxu0 %v78_v6  ;;  %v85_v13 = vsub.f32 %v83_v11, %v84_v12 }
   0xb   :  { %v80_v8 = vand.u32 4294901760, %v79_v7 }
   0xc   :  { %165 = vmatpush.msrb.mxu0 %v84_v12  ;;  %v86_v14 = vand.u32 4294901760, %v85_v13 }
   0xd   :  { %81 = vmatpush.msra.mxu1 %v80_v8 }
   0xf   :  { %87 = vmatpush.msra.mxu1 %v86_v14 }
  0x11   :  { %186 = vmatpush.msrb.mxu1 %v49_v4 }
  0x13   :  { %188 = vmatpush.msrb.mxu1 %v51_v10 }
  0x75   :  { %v21_v17 = vpop.permute.xlu0 %20 }
  0x76   :  { %vm22_vm2 = vcmp.eq.s32.totalorder %v21_v17, %v18_v16 }
  0x77   :  { %v238_v19 = vsel %vm22_vm2, 1.0, %v275_v18 }
  0x78   :  { %239 = vmatmul.msk.f32.vlgmr.msra.gmra.mxu1 %vm27_vm1, %v238_v19  ;;  %v29_v20 = vsel %vm27_vm1, %v238_v19, 0 }
  0x79   :  { %v54_v21 = vsub.f32 %v29_v20, %v29_v20 }
  0x7b   :  { %115 = vmatmul.f32.vlgmr.msra.gmra.mxu2 %v54_v21  ;;  %v55_v22 = vand.u32 4294901760, %v54_v21 }
  0x7d   :  { %140 = vmatmul.f32.vlgmr.msra.gmra.mxu3 %v55_v22  ;;  %v56_v23 = vsub.f32 %v54_v21, %v55_v22 }
  0x7f   :  { %v57_v24 = vand.u32 4294901760, %v56_v23 }
  0x80   :  { %241 = vmatmul.msk.f32.vlgmr.msrb.gmra.mxu1 %vm27_vm1, %v238_v19 }
  0x81   :  { %58 = vmatmul.f32.vlgmr.msra.gmra.mxu0 %v57_v24 }
  0x89   :  { %240 = vmatmul.msk.f32.vlgmr.msrb.gmra.mxu0 %vm27_vm1, %v238_v19 }
  0xf5   :  { %v90_v25 = vpop.f32.mrf.mxu1 }
  0xfd   :  { %v191_v34 = vpop.f32.mrf.mxu1 }
  0xfe   :  { %v59_v26 = vpop.f32.mrf.mxu0  ;;  %v116_v28 = vpop.f32.mrf.mxu2 }
  0xff   :  { %v91_v27 = vadd.f32 %v90_v25, %v59_v26 }
 0x100   :  { %v141_v30 = vpop.f32.mrf.mxu3 }
 0x101   :  { %v117_v29 = vadd.f32 %v116_v28, %v91_v27 }
 0x103   :  { %v142_v31 = vadd.f32 %v141_v30, %v117_v29 }
 0x106   :  { %v168_v32 = vpop.f32.mrf.mxu0 }
 0x107   :  { %v169_v33 = vadd.f32 %v168_v32, %v142_v31 }
 0x109   :  { %v192_v36 = vadd.f32 %v191_v34, %v169_v33 }
 0x10b   :  { %v195_v37 = vsub.f32 %v194_v35, %v192_v36 }
 0x10d   :  { %v196_v38 = vmul.f32 %v195_v37, %v195_v37 }
 0x10f   :  { %v198_v39 = vsel %vm197_vm3, %v196_v38, 0.0 }
 0x110   :  { %199 = vadd.xlane.f32.xlu0 %v198_v39 }
 0x183   :  { %v200_v40 = vpop.xlane.xlu0 %199 }
 0x184   :  { %v201_v41 = vmax.f32 %v200_v40, 1e-12 }
 0x186   :  { %v202_v42 = vmin.f32 %v201_v41, 1e+12 }
 0x188   :  { %v210_v43 = vsel %vm209_vm4, %v202_v42, 0.0 }
 0x189   :  { %211 = vadd.xlane.f32.xlu1 %v210_v43 }
 0x1fc   :  { %v212_v44 = vpop.xlane.xlu1 %211 }
 0x1fd   :  { %v213_v45 = vrot.slane %v212_v44, 4 }
 0x1ff   :  { %v214_v46 = vadd.f32 %v213_v45, %v212_v44 }
 0x201   :  { %v215_v47 = vrot.slane %v214_v46, 2 }
 0x203   :  { %v216_v48 = vadd.f32 %v215_v47, %v214_v46 }
 0x205   :  { %v217_v49 = vrot.slane %v216_v48, 1 }
 0x207   :  { %v218_v50 = vadd.f32 %v217_v49, %v216_v48 }
 0x209   :  { %242 = vpush %v218_v50 }
 0x23a   :  { %s243_s22 = spop %242 }
 0x23b   :  { %v220_v51 = vstv %s243_s22 }
 0x23c   :  { %221 = vst [vmem:[#allocation2] sm:$0xff] %v220_v51 }
 0x23d   :  { %232 = dma.vmem_to_hbm [thread:$0]  %s228_s18, 128, %s230_s21, [#allocation3]  }
 0x23e   :  { %272 = dma.done.wait [#allocation3], 128  }
 0x23f   :  { %273 = vsyncadd [#allocation3], 4294967168 }
 0x240   :  { %237 = vsyncpa [#allocation3], 1 }

</bundles_post_ra>
